<compile_context>
chip_gen: v7x
topology: tpu7x:2x2x1
jax: 0.10.0
libtpu: 0.0.40
codegen_flags: <defaults>
</compile_context>

<pallas_src>
import jax
import jax.numpy as jnp
import numpy as np
from jax import lax
from jax.experimental import pallas as pl
from jax.experimental.pallas import tpu as pltpu

LANE = 128   # vreg lane width — pad all feature / contraction dims to this
SUB = 8      # f32 sublane granularity


def _round_up(v, m):
    return ((v + m - 1) // m) * m


def _pad2d(a, rows, cols):
    r, c = a.shape
    return jnp.pad(a.astype(jnp.float32), ((0, rows - r), (0, cols - c)))


def _pad_idx(idx, rows):
    idx = idx.astype(jnp.int32).reshape(-1, 1)
    # Pad with -1 so padded one-hot rows select nothing (all-zero rows).
    return jnp.pad(idx, ((0, rows - idx.shape[0]), (0, 0)), constant_values=-1)


# ----------------------------------------------------------------------------
# Fused kernel: 2x GraphConv+ReLU -> one-hot gathers -> Linear -> emb @ proj.T
# ----------------------------------------------------------------------------
def cell2vec_kernel(xi_ref, ci_ref,                              # int32 (rows, 1)
                    a_ref, x_ref, w1_ref, b1_ref,                 # VMEM inputs
                    w2_ref, b2_ref, wp_ref, bp_ref, emb_ref,
                    o_ref):                                       # VMEM output
    f32 = jnp.float32

    # ---- GCN layer 1:  relu(A_hat @ (X @ W1) + b1) ----
    xw = jnp.dot(x_ref[...], w1_ref[...], preferred_element_type=f32)
    h1 = jnp.maximum(
        jnp.dot(a_ref[...], xw, preferred_element_type=f32) + b1_ref[...], 0.0)

    # ---- GCN layer 2:  relu(A_hat @ (H1 @ W2) + b2) ----
    hw = jnp.dot(h1, w2_ref[...], preferred_element_type=f32)
    enc = jnp.maximum(
        jnp.dot(a_ref[...], hw, preferred_element_type=f32) + b2_ref[...], 0.0)

    # ---- encoded.index_select(0, x_indices): one-hot MXU gather ----
    mp, np_ = xi_ref.shape[0], a_ref.shape[0]
    sel_x = (lax.broadcasted_iota(jnp.int32, (mp, np_), 1)
             == xi_ref[...]).astype(f32)                          # (mp, np_)
    enc_sel = jnp.dot(sel_x, enc, preferred_element_type=f32)     # (mp, outp)

    # ---- embeddings(c_indices): one-hot MXU gather ----
    cp, cellp = ci_ref.shape[0], emb_ref.shape[0]
    sel_c = (lax.broadcasted_iota(jnp.int32, (cp, cellp), 1)
             == ci_ref[...]).astype(f32)                          # (cp, cellp)
    emb_sel = jnp.dot(sel_c, emb_ref[...], preferred_element_type=f32)  # (cp, dimp)

    # ---- projector: Linear (+ Dropout == identity in eval mode) ----
    # TODO(synk): nn.Dropout is implemented as eval-mode identity (no RNG mask).
    proj = jnp.dot(enc_sel, wp_ref[...], preferred_element_type=f32) + bp_ref[...]

    # ---- emb @ proj.T as an NT matmul (contract last dims; no XLU transpose) ----
    o_ref[...] = lax.dot_general(
        emb_sel, proj,
        dimension_numbers=(((1,), (1,)), ((), ())),
        preferred_element_type=f32)                               # (cp, mp)


# ----------------------------------------------------------------------------
# Wrapper: lane-pad everything, single pallas_call, slice padding off
# ----------------------------------------------------------------------------
@jax.jit
def cell2vec_forward(a_hat, x, x_indices, c_indices, params):
    n = a_hat.shape[0]
    in_f = x.shape[1]
    hid = params["w1"].shape[1]
    out_f = params["w2"].shape[1]
    n_dim = params["wp"].shape[1]
    n_cell = params["embeddings"].shape[0]
    m = x_indices.shape[0]
    c = c_indices.shape[0]

    # Lane-dense padding (zeros are exact for the math; see reference check).
    np_ = max(_round_up(n, SUB), LANE)          # node dim (lane dim of A_hat)
    inp = _round_up(in_f, LANE)
    hidp = _round_up(hid, LANE)
    outp = _round_up(out_f, LANE)
    dimp = _round_up(n_dim, LANE)
    cellp = max(_round_up(n_cell, SUB), LANE)   # contraction dim of emb gather
    mp = _round_up(m, LANE)                     # output lane dim
    cp = _round_up(c, SUB)                      # output sublane dim

    a_p = _pad2d(a_hat, np_, np_)
    x_p = _pad2d(x, np_, inp)
    w1_p = _pad2d(params["w1"], inp, hidp)
    b1_p = _pad2d(params["b1"], 1, hidp)
    w2_p = _pad2d(params["w2"], hidp, outp)
    b2_p = _pad2d(params["b2"], 1, outp)
    wp_p = _pad2d(params["wp"], outp, dimp)
    bp_p = _pad2d(params["bp"], 1, dimp)
    emb_p = _pad2d(params["embeddings"], cellp, dimp)
    xi_p = _pad_idx(x_indices, mp)
    ci_p = _pad_idx(c_indices, cp)

    vspec = pl.BlockSpec(memory_space=pltpu.MemorySpace.VMEM)

    out_pad = pl.pallas_call(
        cell2vec_kernel,
        out_shape=jax.ShapeDtypeStruct((cp, mp), jnp.float32),
        in_specs=[vspec] * 11,
        out_specs=vspec,
    )(xi_p, ci_p, a_p, x_p, w1_p, b1_p, w2_p, b2_p, wp_p, bp_p, emb_p)

    return out_pad[:c, :m]


# ----------------------------------------------------------------------------
# Pure-JAX reference (for correctness check)
# ----------------------------------------------------------------------------
def cell2vec_reference(a_hat, x, x_indices, c_indices, params):
    h = jnp.maximum(a_hat @ (x @ params["w1"]) + params["b1"], 0.0)
    encoded = jnp.maximum(a_hat @ (h @ params["w2"]) + params["b2"], 0.0)
    enc_sel = encoded[x_indices]
    proj = enc_sel @ params["wp"] + params["bp"]
    emb_sel = params["embeddings"][c_indices]
    return emb_sel @ proj.T


# ----------------------------------------------------------------------------
# Main
# ----------------------------------------------------------------------------
if __name__ == "__main__":
    # Small shapes consistent with the module.
    N = 16            # number of graph nodes
    IN_F = 8          # GCNEncoder in_features
    OUT_F = 32        # GCNEncoder out_features
    HID = 2 * OUT_F   # hidden width of first GraphConv (k = 2)
    N_CELL = 10
    N_DIM = 16
    M = 8             # len(x_indices)
    C = 6             # len(c_indices)

    key = jax.random.PRNGKey(0)
    keys = jax.random.split(key, 10)

    # Node features.
    x = jax.random.normal(keys[0], (N, IN_F), dtype=jnp.float32)

    # Random undirected graph (ring guarantees degree >= 1), then DGL-style
    # symmetric normalization A_hat = D^-1/2 A D^-1/2 (no self-loops).
    rand_adj = (jax.random.uniform(keys[1], (N, N)) < 0.25).astype(jnp.float32)
    ring = jnp.roll(jnp.eye(N, dtype=jnp.float32), 1, axis=1)
    adj = jnp.clip(rand_adj + rand_adj.T + ring + ring.T, 0.0, 1.0)
    adj = adj * (1.0 - jnp.eye(N, dtype=jnp.float32))
    deg = jnp.sum(adj, axis=1)
    d_inv_sqrt = 1.0 / jnp.sqrt(jnp.maximum(deg, 1.0))
    a_hat = (d_inv_sqrt[:, None] * adj) * d_inv_sqrt[None, :]

    # Deterministic synthetic parameters (biases kept 2D (1, F)).
    params = {
        "w1": jax.random.normal(keys[2], (IN_F, HID), dtype=jnp.float32) * 0.2,
        "b1": jax.random.normal(keys[3], (1, HID), dtype=jnp.float32) * 0.1,
        "w2": jax.random.normal(keys[4], (HID, OUT_F), dtype=jnp.float32) * 0.2,
        "b2": jax.random.normal(keys[5], (1, OUT_F), dtype=jnp.float32) * 0.1,
        "wp": jax.random.normal(keys[6], (OUT_F, N_DIM), dtype=jnp.float32) * 0.2,
        "bp": jax.random.normal(keys[7], (1, N_DIM), dtype=jnp.float32) * 0.1,
        "embeddings": jax.random.normal(keys[8], (N_CELL, N_DIM), dtype=jnp.float32),
    }

    x_indices = jax.random.randint(keys[9], (M,), 0, N, dtype=jnp.int32)
    c_indices = jax.random.randint(jax.random.fold_in(key, 123), (C,), 0, N_CELL,
                                   dtype=jnp.int32)

    out = cell2vec_forward(a_hat, x, x_indices, c_indices, params)
    out = jax.block_until_ready(out)

    ref = cell2vec_reference(a_hat, x, x_indices, c_indices, params)
    np.testing.assert_allclose(np.asarray(out), np.asarray(ref),
                               rtol=1e-5, atol=1e-5)
    assert out.shape == (C, M)

    print("KERNEL_OK")
</pallas_src>

<mosaic_0001>
module attributes {stable_mosaic.version = 11 : i64} {
  func.func @cell2vec_kernel(%arg0: memref<128x1xi32, #tpu.memory_space<vmem>>, %arg1: memref<8x1xi32, #tpu.memory_space<vmem>>, %arg2: memref<128x128xf32, #tpu.memory_space<vmem>>, %arg3: memref<128x128xf32, #tpu.memory_space<vmem>>, %arg4: memref<128x128xf32, #tpu.memory_space<vmem>>, %arg5: memref<1x128xf32, #tpu.memory_space<vmem>>, %arg6: memref<128x128xf32, #tpu.memory_space<vmem>>, %arg7: memref<1x128xf32, #tpu.memory_space<vmem>>, %arg8: memref<128x128xf32, #tpu.memory_space<vmem>>, %arg9: memref<1x128xf32, #tpu.memory_space<vmem>>, %arg10: memref<128x128xf32, #tpu.memory_space<vmem>>, %arg11: memref<8x128xf32, #tpu.memory_space<vmem>>) attributes {dimension_semantics = [], scalar_prefetch = 0 : i64, scratch_operands = 0 : i64, tpu.core_type = #tpu.core_type<tc>} {
    %c0 = arith.constant 0 : index
    %c0_0 = arith.constant 0 : index
    %0 = vector.load %arg3[%c0, %c0_0] : memref<128x128xf32, #tpu.memory_space<vmem>>, vector<128x128xf32>
    %c0_1 = arith.constant 0 : index
    %c0_2 = arith.constant 0 : index
    %1 = vector.load %arg4[%c0_1, %c0_2] : memref<128x128xf32, #tpu.memory_space<vmem>>, vector<128x128xf32>
    %cst = arith.constant dense<0.000000e+00> : vector<128x128xf32>
    %2 = tpu.matmul %0, %1, %cst {dimension_numbers = #tpu.dot_dimension_numbers<[1], [0], [0], [1], [0, 0, 1, 1], [], []>} : vector<128x128xf32>, vector<128x128xf32>, vector<128x128xf32> -> vector<128x128xf32>
    %c0_3 = arith.constant 0 : index
    %c0_4 = arith.constant 0 : index
    %3 = vector.load %arg2[%c0_3, %c0_4] : memref<128x128xf32, #tpu.memory_space<vmem>>, vector<128x128xf32>
    %cst_5 = arith.constant dense<0.000000e+00> : vector<128x128xf32>
    %4 = tpu.matmul %3, %2, %cst_5 {dimension_numbers = #tpu.dot_dimension_numbers<[1], [0], [0], [1], [0, 0, 1, 1], [], []>} : vector<128x128xf32>, vector<128x128xf32>, vector<128x128xf32> -> vector<128x128xf32>
    %c0_6 = arith.constant 0 : index
    %c0_7 = arith.constant 0 : index
    %5 = vector.load %arg5[%c0_6, %c0_7] : memref<1x128xf32, #tpu.memory_space<vmem>>, vector<1x128xf32>
    %6 = vector.broadcast %5 : vector<1x128xf32> to vector<128x128xf32>
    %7 = arith.addf %4, %6 : vector<128x128xf32>
    %cst_8 = arith.constant 0.000000e+00 : f32
    %8 = vector.broadcast %cst_8 : f32 to vector<128x128xf32>
    %9 = arith.maximumf %7, %8 : vector<128x128xf32>
    %c0_9 = arith.constant 0 : index
    %c0_10 = arith.constant 0 : index
    %10 = vector.load %arg6[%c0_9, %c0_10] : memref<128x128xf32, #tpu.memory_space<vmem>>, vector<128x128xf32>
    %cst_11 = arith.constant dense<0.000000e+00> : vector<128x128xf32>
    %11 = tpu.matmul %9, %10, %cst_11 {dimension_numbers = #tpu.dot_dimension_numbers<[1], [0], [0], [1], [0, 0, 1, 1], [], []>} : vector<128x128xf32>, vector<128x128xf32>, vector<128x128xf32> -> vector<128x128xf32>
    %c0_12 = arith.constant 0 : index
    %c0_13 = arith.constant 0 : index
    %12 = vector.load %arg2[%c0_12, %c0_13] : memref<128x128xf32, #tpu.memory_space<vmem>>, vector<128x128xf32>
    %cst_14 = arith.constant dense<0.000000e+00> : vector<128x128xf32>
    %13 = tpu.matmul %12, %11, %cst_14 {dimension_numbers = #tpu.dot_dimension_numbers<[1], [0], [0], [1], [0, 0, 1, 1], [], []>} : vector<128x128xf32>, vector<128x128xf32>, vector<128x128xf32> -> vector<128x128xf32>
    %c0_15 = arith.constant 0 : index
    %c0_16 = arith.constant 0 : index
    %14 = vector.load %arg7[%c0_15, %c0_16] : memref<1x128xf32, #tpu.memory_space<vmem>>, vector<1x128xf32>
    %15 = vector.broadcast %14 : vector<1x128xf32> to vector<128x128xf32>
    %16 = arith.addf %13, %15 : vector<128x128xf32>
    %cst_17 = arith.constant 0.000000e+00 : f32
    %17 = vector.broadcast %cst_17 : f32 to vector<128x128xf32>
    %18 = arith.maximumf %16, %17 : vector<128x128xf32>
    %19 = tpu.iota {dimensions = array<i32: 1>} : vector<128x128xi32>
    %c0_18 = arith.constant 0 : index
    %c0_19 = arith.constant 0 : index
    %20 = vector.load %arg0[%c0_18, %c0_19] : memref<128x1xi32, #tpu.memory_space<vmem>>, vector<128x1xi32>
    %21 = vector.broadcast %20 : vector<128x1xi32> to vector<128x128xi32>
    %22 = arith.cmpi eq, %19, %21 : vector<128x128xi32>
    %23 = arith.extui %22 : vector<128x128xi1> to vector<128x128xi32>
    %24 = arith.sitofp %23 : vector<128x128xi32> to vector<128x128xf32>
    %cst_20 = arith.constant dense<0.000000e+00> : vector<128x128xf32>
    %25 = tpu.matmul %24, %18, %cst_20 {dimension_numbers = #tpu.dot_dimension_numbers<[1], [0], [0], [1], [0, 0, 1, 1], [], []>} : vector<128x128xf32>, vector<128x128xf32>, vector<128x128xf32> -> vector<128x128xf32>
    %26 = tpu.iota {dimensions = array<i32: 1>} : vector<8x128xi32>
    %c0_21 = arith.constant 0 : index
    %c0_22 = arith.constant 0 : index
    %27 = vector.load %arg1[%c0_21, %c0_22] : memref<8x1xi32, #tpu.memory_space<vmem>>, vector<8x1xi32>
    %28 = vector.broadcast %27 : vector<8x1xi32> to vector<8x128xi32>
    %29 = arith.cmpi eq, %26, %28 : vector<8x128xi32>
    %30 = arith.extui %29 : vector<8x128xi1> to vector<8x128xi32>
    %31 = arith.sitofp %30 : vector<8x128xi32> to vector<8x128xf32>
    %c0_23 = arith.constant 0 : index
    %c0_24 = arith.constant 0 : index
    %32 = vector.load %arg10[%c0_23, %c0_24] : memref<128x128xf32, #tpu.memory_space<vmem>>, vector<128x128xf32>
    %cst_25 = arith.constant dense<0.000000e+00> : vector<8x128xf32>
    %33 = tpu.matmul %31, %32, %cst_25 {dimension_numbers = #tpu.dot_dimension_numbers<[1], [0], [0], [1], [0, 0, 1, 1], [], []>} : vector<8x128xf32>, vector<128x128xf32>, vector<8x128xf32> -> vector<8x128xf32>
    %c0_26 = arith.constant 0 : index
    %c0_27 = arith.constant 0 : index
    %34 = vector.load %arg8[%c0_26, %c0_27] : memref<128x128xf32, #tpu.memory_space<vmem>>, vector<128x128xf32>
    %cst_28 = arith.constant dense<0.000000e+00> : vector<128x128xf32>
    %35 = tpu.matmul %25, %34, %cst_28 {dimension_numbers = #tpu.dot_dimension_numbers<[1], [0], [0], [1], [0, 0, 1, 1], [], []>} : vector<128x128xf32>, vector<128x128xf32>, vector<128x128xf32> -> vector<128x128xf32>
    %c0_29 = arith.constant 0 : index
    %c0_30 = arith.constant 0 : index
    %36 = vector.load %arg9[%c0_29, %c0_30] : memref<1x128xf32, #tpu.memory_space<vmem>>, vector<1x128xf32>
    %37 = vector.broadcast %36 : vector<1x128xf32> to vector<128x128xf32>
    %38 = arith.addf %35, %37 : vector<128x128xf32>
    %cst_31 = arith.constant dense<0.000000e+00> : vector<8x128xf32>
    %39 = tpu.matmul %33, %38, %cst_31 {dimension_numbers = #tpu.dot_dimension_numbers<[1], [1], [0], [0], [0, 0, 1, 0], [], []>} : vector<8x128xf32>, vector<128x128xf32>, vector<8x128xf32> -> vector<8x128xf32>
    %c0_32 = arith.constant 0 : index
    %c0_33 = arith.constant 0 : index
    %40 = vector.load %arg11[%c0_32, %c0_33] : memref<8x128xf32, #tpu.memory_space<vmem>>, vector<8x128xf32>
    tpu.vector_store %arg11[%c0_32, %c0_33], %39 {strides = array<i32>} : memref<8x128xf32, #tpu.memory_space<vmem>>, vector<8x128xf32>,
    return
  }
}

</mosaic_0001>

<bundles_post_ra>
// kernel: cell2vec_forward.1
= control target key start
LH: loop header
LB: loop body
LE: loop exit
PB: predicated region body
PF: predicated region fallthrough
CT: control target
= control target key end

     0   :  { %s2883_s0 = inlined_call_operand.vmem [shape: s32[128,1], index: 0, kind: input, shape index: {}]   ;;  %s2884_s1 = inlined_call_operand.vmem [shape: s32[8,1], index: 1, kind: input, shape index: {}]   ;;  %s2885_s2 = inlined_call_operand.vmem [shape: f32[128,128], index: 2, kind: input, shape index: {}]   ;;  %s2886_s3 = inlined_call_operand.vmem [shape: f32[128,128], index: 3, kind: input, shape index: {}]   ;;  %s2887_s4 = inlined_call_operand.vmem [shape: f32[128,128], index: 4, kind: input, shape index: {}]   ;;  %s2888_s5 = inlined_call_operand.vmem [shape: f32[1,128], index: 5, kind: input, shape index: {}]   ;;  %s2889_s6 = inlined_call_operand.vmem [shape: f32[128,128], index: 6, kind: input, shape index: {}]   ;;  %s2890_s7 = inlined_call_operand.vmem [shape: f32[1,128], index: 7, kind: input, shape index: {}]   ;;  %s2891_s8 = inlined_call_operand.vmem [shape: f32[128,128], index: 8, kind: input, shape index: {}]   ;;  %s2892_s9 = inlined_call_operand.vmem [shape: f32[1,128], index: 9, kind: input, shape index: {}]   ;;  %s2893_s10 = inlined_call_operand.vmem [shape: f32[128,128], index: 10, kind: input, shape index: {}]   ;;  %s2894_s11 = inlined_call_operand.hbm [shape: f32[8,128], index: 11, kind: output, shape index: {}]  }
   0x1   :  { %v55_v0 = vld [vmem:[%s2887_s4] sm:$0xff]  ;;  %v56_v1 = vld [vmem:[%s2887_s4 + $0x8] sm:$0xff]  ;;  %v57_v2 = vld [vmem:[%s2887_s4 + $0x10] sm:$0xff] }
   0x2   :  { %v2003_v3 = vpack.c.bf16 %v56_v1, %v55_v0  ;;  %v58_v4 = vld [vmem:[%s2887_s4 + $0x18] sm:$0xff]  ;;  %v59_v6 = vld [vmem:[%s2887_s4 + $0x20] sm:$0xff]  ;;  %v60_v7 = vld [vmem:[%s2887_s4 + $0x28] sm:$0xff] }
   0x3   :  { %v2007_v5 = vpack.c.bf16 %v58_v4, %v57_v2  ;;  %v2011_v8 = vpack.c.bf16 %v60_v7, %v59_v6  ;;  %v39_v9 = vld [vmem:[%s2886_s3] sm:$0xff]  ;;  %v61_v10 = vld [vmem:[%s2887_s4 + $0x30] sm:$0xff]  ;;  %v62_v11 = vld [vmem:[%s2887_s4 + $0x38] sm:$0xff] }
   0x4   :  { %2004 = vmatprep.subr.bf16.mxu0 %v2003_v3  ;;  %1629 = vmatprep.mubr.f32.mxu0 %v39_v9  ;;  %v2015_v12 = vpack.c.bf16 %v62_v11, %v61_v10  ;;  %v63_v13 = vld [vmem:[%s2887_s4 + $0x40] sm:$0xff]  ;;  %v64_v14 = vld [vmem:[%s2887_s4 + $0x48] sm:$0xff] }
   0x5   :  { %2006 = vmatpush3.bf16.msra.mxu0 %v2003_v3 }
   0x6   :  { %2008 = vmatprep.subr.bf16.mxu0 %v2007_v5 }
   0x9   :  { %2010 = vmatpush3.bf16.msra.mxu0 %v2007_v5 }
   0xa   :  { %2012 = vmatprep.subr.bf16.mxu0 %v2011_v8 }
   0xb   :  { %16 = vsyncpa [#allocation3], 0  ;;  %v2019_v15 = vpack.c.bf16 %v64_v14, %v63_v13  ;;  %v65_v16 = vld [vmem:[%s2887_s4 + $0x50] sm:$0xff]  ;;  %v66_v17 = vld [vmem:[%s2887_s4 + $0x58] sm:$0xff]  ;;  %vm2277_vm9 = vmmov 0  }
   0xc   :  { %v2023_v18 = vpack.c.bf16 %v66_v17, %v65_v16  ;;  %v67_v19 = vld [vmem:[%s2887_s4 + $0x60] sm:$0xff]  ;;  %v68_v20 = vld [vmem:[%s2887_s4 + $0x68] sm:$0xff]  ;;  %v69_v22 = vld [vmem:[%s2887_s4 + $0x70] sm:$0xff] }
   0xd   :  { %2014 = vmatpush3.bf16.msra.mxu0 %v2011_v8  ;;  %v2027_v21 = vpack.c.bf16 %v68_v20, %v67_v19  ;;  %v70_v23 = vld [vmem:[%s2887_s4 + $0x78] sm:$0xff]  ;;  %v40_v25 = vld [vmem:[%s2886_s3 + $0x8] sm:$0xff]  ;;  %v41_v26 = vld [vmem:[%s2886_s3 + $0x10] sm:$0xff] }
   0xe   :  { %2016 = vmatprep.subr.bf16.mxu0 %v2015_v12  ;;  %v2031_v24 = vpack.c.bf16 %v70_v23, %v69_v22  ;;  %v42_v27 = vld [vmem:[%s2886_s3 + $0x18] sm:$0xff]  ;;  %v43_v28 = vld [vmem:[%s2886_s3 + $0x20] sm:$0xff]  ;;  %v44_v29 = vld [vmem:[%s2886_s3 + $0x28] sm:$0xff] }
   0xf   :  { %v45_v30 = vld [vmem:[%s2886_s3 + $0x30] sm:$0xff]  ;;  %v46_v31 = vld [vmem:[%s2886_s3 + $0x38] sm:$0xff]  ;;  %v47_v32 = vld [vmem:[%s2886_s3 + $0x40] sm:$0xff] }
  0x10   :  { %v48_v33 = vld [vmem:[%s2886_s3 + $0x48] sm:$0xff]  ;;  %v49_v34 = vld [vmem:[%s2886_s3 + $0x50] sm:$0xff]  ;;  %v50_v35 = vld [vmem:[%s2886_s3 + $0x58] sm:$0xff] }
  0x11   :  { %2018 = vmatpush3.bf16.msra.mxu0 %v2015_v12  ;;  %v51_v36 = vld [vmem:[%s2886_s3 + $0x60] sm:$0xff]  ;;  %v52_v37 = vld [vmem:[%s2886_s3 + $0x68] sm:$0xff]  ;;  %v53_v38 = vld [vmem:[%s2886_s3 + $0x70] sm:$0xff] }
  0x12   :  { %2020 = vmatprep.subr.bf16.mxu0 %v2019_v15  ;;  %v54_v39 = vld [vmem:[%s2886_s3 + $0x78] sm:$0xff]  ;;  %v2440_v40 = vld [vmem:[%s2885_s2] sm:$0xff]  ;;  %v401_v42 = vld [vmem:[%s2889_s6 + $0x8] sm:$0xff] }
  0x13   :  { %1685 = vmatprep.mubr.f32.mxu1 %v2440_v40  ;;  %v400_v41 = vld [vmem:[%s2889_s6] sm:$0xff]  ;;  %v402_v43 = vld [vmem:[%s2889_s6 + $0x10] sm:$0xff]  ;;  %v403_v45 = vld [vmem:[%s2889_s6 + $0x18] sm:$0xff] }
  0x14   :  { %v2067_v44 = vpack.c.bf16 %v401_v42, %v400_v41  ;;  %v2071_v46 = vpack.c.bf16 %v403_v45, %v402_v43  ;;  %v404_v47 = vld [vmem:[%s2889_s6 + $0x20] sm:$0xff]  ;;  %v405_v48 = vld [vmem:[%s2889_s6 + $0x28] sm:$0xff]  ;;  %v406_v50 = vld [vmem:[%s2889_s6 + $0x30] sm:$0xff] }
  0x15   :  { %2022 = vmatpush3.bf16.msra.mxu0 %v2019_v15  ;;  %v2075_v49 = vpack.c.bf16 %v405_v48, %v404_v47  ;;  %v407_v51 = vld [vmem:[%s2889_s6 + $0x38] sm:$0xff]  ;;  %v408_v53 = vld [vmem:[%s2889_s6 + $0x40] sm:$0xff]  ;;  %v409_v54 = vld [vmem:[%s2889_s6 + $0x48] sm:$0xff] }
  0x16   :  { %2024 = vmatprep.subr.bf16.mxu0 %v2023_v18  ;;  %v2079_v52 = vpack.c.bf16 %v407_v51, %v406_v50  ;;  %v2083_v55 = vpack.c.bf16 %v409_v54, %v408_v53  ;;  %v410_v56 = vld [vmem:[%s2889_s6 + $0x50] sm:$0xff]  ;;  %v411_v57 = vld [vmem:[%s2889_s6 + $0x58] sm:$0xff]  ;;  %v412_v59 = vld [vmem:[%s2889_s6 + $0x60] sm:$0xff] }
  0x17   :  { %v2087_v58 = vpack.c.bf16 %v411_v57, %v410_v56  ;;  %v413_v60 = vld [vmem:[%s2889_s6 + $0x68] sm:$0xff]  ;;  %v2493_v23 = vld [vmem:[%s2885_s2 + $0x10] sm:$0xff]  ;;  %v1334_v41 = vld [vmem:[%s2888_s5] ss:$0 sm:$0xff] }
  0x18   :  { %v2091_v61 = vpack.c.bf16 %v413_v60, %v412_v59  ;;  %v2488_v22 = vld [vmem:[%s2885_s2 + $0x8] sm:$0xff] }
  0x19   :  { %2026 = vmatpush3.bf16.msra.mxu0 %v2023_v18 }
  0x1a   :  { %2028 = vmatprep.subr.bf16.mxu0 %v2027_v21 }
  0x1d   :  { %2030 = vmatpush3.bf16.msra.mxu0 %v2027_v21 }
  0x1e   :  { %2032 = vmatprep.subr.bf16.mxu0 %v2031_v24 }
  0x21   :  { %2034 = vmatpush3.bf16.msra.mxu0 %v2031_v24  ;;  %v2500_v24 = vld [vmem:[%s2885_s2 + $0x18] sm:$0xff] }
  0x22   :  { %2068 = vmatprep.subr.bf16.mxu0 %v2067_v44 }
  0x24   :  { %1630 = vmatmul.mubr.f32.vlgmr.msra.gmra.mrb[0].mxu0 %v40_v25  ;;  %v2505_v25 = vld [vmem:[%s2885_s2 + $0x20] sm:$0xff] }
  0x25   :  { %1632 = vmatprep.mubr.f32.mxu0 %v41_v26  ;;  %2070 = vmatpush3.bf16.msra.mxu0 %v2067_v44  ;;  %v2512_v26 = vld [vmem:[%s2885_s2 + $0x28] sm:$0xff] }
  0x26   :  { %2072 = vmatprep.subr.bf16.mxu0 %v2071_v46 }
  0x28   :  { %1633 = vmatmul.mubr.f32.gmra.mrb[2].mxu0 %v42_v27  ;;  %v2517_v27 = vld [vmem:[%s2885_s2 + $0x30] sm:$0xff] }
  0x29   :  { %1635 = vmatprep.mubr.f32.mxu0 %v43_v28  ;;  %2074 = vmatpush3.bf16.msra.mxu0 %v2071_v46  ;;  %v2524_v28 = vld [vmem:[%s2885_s2 + $0x38] sm:$0xff] }
  0x2a   :  { %2076 = vmatprep.subr.bf16.mxu0 %v2075_v49 }
  0x2c   :  { %1636 = vmatmul.mubr.f32.gmra.mrb[4].mxu0 %v44_v29  ;;  %v2529_v29 = vld [vmem:[%s2885_s2 + $0x40] sm:$0xff] }
  0x2d   :  { %1638 = vmatprep.mubr.f32.mxu0 %v45_v30  ;;  %2078 = vmatpush3.bf16.msra.mxu0 %v2075_v49  ;;  %v2536_v30 = vld [vmem:[%s2885_s2 + $0x48] sm:$0xff] }
  0x2e   :  { %2080 = vmatprep.subr.bf16.mxu0 %v2079_v52 }
  0x30   :  { %1639 = vmatmul.mubr.f32.gmra.mrb[6].mxu0 %v46_v31  ;;  %v2541_v31 = vld [vmem:[%s2885_s2 + $0x50] sm:$0xff] }
  0x31   :  { %1641 = vmatprep.mubr.f32.mxu0 %v47_v32  ;;  %2082 = vmatpush3.bf16.msra.mxu0 %v2079_v52  ;;  %v2548_v32 = vld [vmem:[%s2885_s2 + $0x58] sm:$0xff] }
  0x32   :  { %2084 = vmatprep.subr.bf16.mxu0 %v2083_v55 }
  0x34   :  { %1642 = vmatmul.mubr.f32.gmra.mrb[8].mxu0 %v48_v33  ;;  %v2553_v33 = vld [vmem:[%s2885_s2 + $0x60] sm:$0xff] }
  0x35   :  { %1644 = vmatprep.mubr.f32.mxu0 %v49_v34  ;;  %2086 = vmatpush3.bf16.msra.mxu0 %v2083_v55  ;;  %v2560_v34 = vld [vmem:[%s2885_s2 + $0x68] sm:$0xff] }
  0x36   :  { %2088 = vmatprep.subr.bf16.mxu0 %v2087_v58 }
  0x38   :  { %1645 = vmatmul.mubr.f32.gmra.mrb[10].mxu0 %v50_v35  ;;  %v2565_v35 = vld [vmem:[%s2885_s2 + $0x70] sm:$0xff] }
  0x39   :  { %1647 = vmatprep.mubr.f32.mxu0 %v51_v36  ;;  %2090 = vmatpush3.bf16.msra.mxu0 %v2087_v58  ;;  %v2572_v36 = vld [vmem:[%s2885_s2 + $0x78] sm:$0xff] }
  0x3a   :  { %2092 = vmatprep.subr.bf16.mxu0 %v2091_v61 }
  0x3c   :  { %1648 = vmatmul.mubr.f32.gmra.mrb[12].mxu0 %v52_v37  ;;  %v414_v37 = vld [vmem:[%s2889_s6 + $0x70] sm:$0xff] }
  0x3d   :  { %1650 = vmatprep.mubr.f32.mxu0 %v53_v38  ;;  %2094 = vmatpush3.bf16.msra.mxu0 %v2091_v61  ;;  %v415_v38 = vld [vmem:[%s2889_s6 + $0x78] sm:$0xff] }
  0x40   :  { %1651 = vmatmul.mubr.f32.gmra.mrb[14].mxu0 %v54_v39  ;;  %v2095_v39 = vpack.c.bf16 %v415_v38, %v414_v37 }
  0x42   :  { %2096 = vmatprep.subr.bf16.mxu0 %v2095_v39 }
  0x43   :  { %2098 = vmatpush3.bf16.msra.mxu0 %v2095_v39 }
  0xf7   :  { %v1631_v62 = vpop.f32.mrb[0].mxu0 }
  0xf8   :  { %v137_v63 = vpop.f32.mrb[1].mxu0 }
  0xf9   :  { %v2035_v0 = vpack.c.bf16 %v1631_v62, %v137_v63 }
  0xfb   :  { %v1634_v1 = vpop.f32.mrb[2].mxu0  ;;  %2036 = vmatprep.subr.bf16.mxu1 %v2035_v0 }
  0xfc   :  { %v147_v2 = vpop.f32.mrb[3].mxu0  ;;  %2038 = vmatpush3.bf16.msra.mxu1 %v2035_v0 }
  0xfd   :  { %v2039_v3 = vpack.c.bf16 %v1634_v1, %v147_v2 }
  0xff   :  { %v1637_v4 = vpop.f32.mrb[4].mxu0  ;;  %2040 = vmatprep.subr.bf16.mxu1 %v2039_v3 }
 0x100   :  { %v157_v5 = vpop.f32.mrb[5].mxu0  ;;  %2042 = vmatpush3.bf16.msra.mxu1 %v2039_v3 }
 0x101   :  { %v2043_v6 = vpack.c.bf16 %v1637_v4, %v157_v5 }
 0x103   :  { %v1640_v7 = vpop.f32.mrb[6].mxu0  ;;  %2044 = vmatprep.subr.bf16.mxu1 %v2043_v6 }
 0x104   :  { %v167_v8 = vpop.f32.mrb[7].mxu0  ;;  %2046 = vmatpush3.bf16.msra.mxu1 %v2043_v6 }
 0x105   :  { %v2047_v9 = vpack.c.bf16 %v1640_v7, %v167_v8 }
 0x107   :  { %v1643_v10 = vpop.f32.mrb[8].mxu0  ;;  %2048 = vmatprep.subr.bf16.mxu1 %v2047_v9 }
 0x108   :  { %v177_v11 = vpop.f32.mrb[9].mxu0  ;;  %2050 = vmatpush3.bf16.msra.mxu1 %v2047_v9 }
 0x109   :  { %v2051_v12 = vpack.c.bf16 %v1643_v10, %v177_v11 }
 0x10b   :  { %v1646_v13 = vpop.f32.mrb[10].mxu0  ;;  %2052 = vmatprep.subr.bf16.mxu1 %v2051_v12 }
 0x10c   :  { %v187_v14 = vpop.f32.mrb[11].mxu0  ;;  %2054 = vmatpush3.bf16.msra.mxu1 %v2051_v12 }
 0x10d   :  { %v2055_v15 = vpack.c.bf16 %v1646_v13, %v187_v14 }
 0x10f   :  { %v1649_v16 = vpop.f32.mrb[12].mxu0  ;;  %2056 = vmatprep.subr.bf16.mxu1 %v2055_v15 }
 0x110   :  { %v197_v17 = vpop.f32.mrb[13].mxu0  ;;  %2058 = vmatpush3.bf16.msra.mxu1 %v2055_v15 }
 0x111   :  { %v2059_v18 = vpack.c.bf16 %v1649_v16, %v197_v17 }
 0x113   :  { %v1652_v19 = vpop.f32.mrb[14].mxu0  ;;  %2060 = vmatprep.subr.bf16.mxu1 %v2059_v18 }
 0x114   :  { %v207_v20 = vpop.f32.mrb[15].mxu0  ;;  %2062 = vmatpush3.bf16.msra.mxu1 %v2059_v18 }
 0x115   :  { %v2063_v21 = vpack.c.bf16 %v1652_v19, %v207_v20 }
 0x117   :  { %2064 = vmatprep.subr.bf16.mxu1 %v2063_v21 }
 0x118   :  { %2066 = vmatpush3.bf16.msra.mxu1 %v2063_v21 }
 0x11b   :  { %1686 = vmatmul.mubr.f32.vlgmr.msra.gmra.mrb[0].mxu1 %v2488_v22 }
 0x11c   :  { %1688 = vmatprep.mubr.f32.mxu1 %v2493_v23 }
 0x11f   :  { %1689 = vmatmul.mubr.f32.gmra.mrb[2].mxu1 %v2500_v24 }
 0x120   :  { %1691 = vmatprep.mubr.f32.mxu1 %v2505_v25 }
 0x123   :  { %1692 = vmatmul.mubr.f32.gmra.mrb[4].mxu1 %v2512_v26 }
 0x124   :  { %1694 = vmatprep.mubr.f32.mxu1 %v2517_v27 }
 0x127   :  { %1695 = vmatmul.mubr.f32.gmra.mrb[6].mxu1 %v2524_v28 }
 0x128   :  { %1697 = vmatprep.mubr.f32.mxu1 %v2529_v29 }
 0x12b   :  { %1698 = vmatmul.mubr.f32.gmra.mrb[8].mxu1 %v2536_v30 }
 0x12c   :  { %1700 = vmatprep.mubr.f32.mxu1 %v2541_v31 }
 0x12f   :  { %1701 = vmatmul.mubr.f32.gmra.mrb[10].mxu1 %v2548_v32 }
 0x130   :  { %1703 = vmatprep.mubr.f32.mxu1 %v2553_v33 }
 0x133   :  { %1704 = vmatmul.mubr.f32.gmra.mrb[12].mxu1 %v2560_v34 }
 0x134   :  { %1706 = vmatprep.mubr.f32.mxu1 %v2565_v35 }
 0x137   :  { %1707 = vmatmul.mubr.f32.gmra.mrb[14].mxu1 %v2572_v36 }
 0x138   :  { %1797 = vmatprep.mubr.f32.mxu1 %v2440_v40 }
 0x1ee   :  { %v1687_v42 = vpop.f32.mrb[0].mxu1 }
 0x1ef   :  { %v311_v43 = vadd.f32 %v1687_v42, %v1334_v41  ;;  %v305_v44 = vpop.f32.mrb[1].mxu1  ;;  %v731_v42 = vld [vmem:[%s2883_s0] sm:$0xff] }
 0x1f0   :  { %v306_v45 = vadd.f32 %v1334_v41, %v305_v44  ;;  %v733_v44 = vld [vmem:[%s2883_s0 + $0x10] sm:$0xff] }
 0x1f1   :  { %v385_v47 = vmax.f32 %v311_v43, 0.0  ;;  %v2275_v43 = vmov 0  }
 0x1f2   :  { %v384_v40 = vmax.f32 %v306_v45, 0.0  ;;  %v1690_v46 = vpop.f32.mrb[2].mxu1  ;;  %2249 = vset.pattern.permute.xlu0 %v2275_v43  ;;  %2250 = vset.pattern.permute.xlu1 %v2275_v43  ;;  %v734_v45 = vld [vmem:[%s2883_s0 + $0x18] sm:$0xff] }
 0x1f3   :  { %v321_v48 = vadd.f32 %v1690_v46, %v1334_v41  ;;  %v315_v49 = vpop.f32.mrb[3].mxu1  ;;  %748 = vperm.xlu0 %2249, %v731_v42   ;;  %754 = vperm.xlu1 %2250, %v733_v44   ;;  %v736_v46 = vld [vmem:[%s2883_s0 + $0x28] sm:$0xff]  ;;  %v1005_v44 = vld [vmem:[%s2893_s10 + $0x50] sm:$0xff] }
 0x1f4   :  { %v316_v50 = vadd.f32 %v1334_v41, %v315_v49  ;;  %1741 = vmatprep.mubr.f32.mxu0 %v384_v40  ;;  %v735_v40 = vld [vmem:[%s2883_s0 + $0x20] sm:$0xff] }
 0x1f5   :  { %1742 = vmatmul.mubr.f32.vlgmr.msra.gmra.mrb[16].mxu0 %v385_v47  ;;  %v387_v53 = vmax.f32 %v321_v48, 0.0  ;;  %v737_v47 = vld [vmem:[%s2883_s0 + $0x30] sm:$0xff]  ;;  %v738_v48 = vld [vmem:[%s2883_s0 + $0x38] sm:$0xff]  ;;  %v739_v49 = vld [vmem:[%s2883_s0 + $0x40] sm:$0xff] }
 0x1f6   :  { %v386_v51 = vmax.f32 %v316_v50, 0.0  ;;  %v1693_v52 = vpop.f32.mrb[4].mxu1  ;;  %v740_v50 = vld [vmem:[%s2883_s0 + $0x48] sm:$0xff] }
 0x1f7   :  { %v331_v54 = vadd.f32 %v1693_v52, %v1334_v41  ;;  %v325_v55 = vpop.f32.mrb[5].mxu1  ;;  %757 = vperm.xlu1 %2250, %v734_v45   ;;  %v742_v52 = vld [vmem:[%s2883_s0 + $0x58] sm:$0xff] }
 0x1f8   :  { %v326_v56 = vadd.f32 %v1334_v41, %v325_v55  ;;  %1744 = vmatprep.mubr.f32.mxu0 %v386_v51  ;;  %v741_v51 = vld [vmem:[%s2883_s0 + $0x50] sm:$0xff] }
 0x1f9   :  { %1745 = vmatmul.mubr.f32.gmra.mrb[18].mxu0 %v387_v53  ;;  %v389_v59 = vmax.f32 %v331_v54, 0.0  ;;  %v743_v53 = vld [vmem:[%s2883_s0 + $0x60] sm:$0xff]  ;;  %v744_v54 = vld [vmem:[%s2883_s0 + $0x68] sm:$0xff]  ;;  %v745_v55 = vld [vmem:[%s2883_s0 + $0x70] sm:$0xff] }
 0x1fa   :  { %v388_v57 = vmax.f32 %v326_v56, 0.0  ;;  %v1696_v58 = vpop.f32.mrb[6].mxu1  ;;  %v746_v56 = vld [vmem:[%s2883_s0 + $0x78] sm:$0xff] }
 0x1fb   :  { %v341_v60 = vadd.f32 %v1696_v58, %v1334_v41  ;;  %v335_v61 = vpop.f32.mrb[7].mxu1  ;;  %763 = vperm.xlu1 %2250, %v736_v46   ;;  %v1007_v46 = vld [vmem:[%s2893_s10 + $0x60] sm:$0xff] }
 0x1fc   :  { %v336_v62 = vadd.f32 %v1334_v41, %v335_v61  ;;  %1747 = vmatprep.mubr.f32.mxu0 %v388_v57  ;;  %v988_v57 = vld [vmem:[%s2884_s1] sm:$0xff] }
 0x1fd   :  { %1748 = vmatmul.mubr.f32.gmra.mrb[20].mxu0 %v389_v59  ;;  %v391_v1 = vmax.f32 %v341_v60, 0.0 }
 0x1fe   :  { %v390_v63 = vmax.f32 %v336_v62, 0.0  ;;  %v1699_v0 = vpop.f32.mrb[8].mxu1 }
 0x1ff   :  { %v351_v2 = vadd.f32 %v1699_v0, %v1334_v41  ;;  %v345_v3 = vpop.f32.mrb[9].mxu1  ;;  %769 = vperm.xlu1 %2250, %v738_v48  }
 0x200   :  { %v346_v4 = vadd.f32 %v1334_v41, %v345_v3  ;;  %1750 = vmatprep.mubr.f32.mxu0 %v390_v63 }
 0x201   :  { %1751 = vmatmul.mubr.f32.gmra.mrb[22].mxu0 %v391_v1  ;;  %v393_v7 = vmax.f32 %v351_v2, 0.0 }
 0x202   :  { %v392_v5 = vmax.f32 %v346_v4, 0.0  ;;  %v1702_v6 = vpop.f32.mrb[10].mxu1 }
 0x203   :  { %v361_v8 = vadd.f32 %v1702_v6, %v1334_v41  ;;  %v355_v9 = vpop.f32.mrb[11].mxu1  ;;  %775 = vperm.xlu1 %2250, %v740_v50   ;;  %v1009_v50 = vld [vmem:[%s2893_s10 + $0x70] sm:$0xff] }
 0x204   :  { %v356_v10 = vadd.f32 %v1334_v41, %v355_v9  ;;  %1753 = vmatprep.mubr.f32.mxu0 %v392_v5 }
 0x205   :  { %1754 = vmatmul.mubr.f32.gmra.mrb[24].mxu0 %v393_v7  ;;  %v395_v13 = vmax.f32 %v361_v8, 0.0 }
 0x206   :  { %v394_v11 = vmax.f32 %v356_v10, 0.0  ;;  %v1705_v12 = vpop.f32.mrb[12].mxu1 }
 0x207   :  { %v371_v14 = vadd.f32 %v1705_v12, %v1334_v41  ;;  %v365_v15 = vpop.f32.mrb[13].mxu1  ;;  %781 = vperm.xlu1 %2250, %v742_v52  }
 0x208   :  { %v366_v16 = vadd.f32 %v1334_v41, %v365_v15  ;;  %1756 = vmatprep.mubr.f32.mxu0 %v394_v11 }
 0x209   :  { %1757 = vmatmul.mubr.f32.gmra.mrb[26].mxu0 %v395_v13  ;;  %v397_v19 = vmax.f32 %v371_v14, 0.0 }
 0x20a   :  { %v396_v17 = vmax.f32 %v366_v16, 0.0  ;;  %v1708_v18 = vpop.f32.mrb[14].mxu1 }
 0x20b   :  { %v381_v20 = vadd.f32 %v1708_v18, %v1334_v41  ;;  %v375_v21 = vpop.f32.mrb[15].mxu1  ;;  %787 = vperm.xlu1 %2250, %v744_v54   ;;  %v2278_v54 = vmov 0.0  }
 0x20c   :  { %v376_v37 = vadd.f32 %v1334_v41, %v375_v21  ;;  %1759 = vmatprep.mubr.f32.mxu0 %v396_v17  ;;  %v732_v41 = vld [vmem:[%s2883_s0 + $0x8] sm:$0xff] }
 0x20d   :  { %1760 = vmatmul.mubr.f32.gmra.mrb[28].mxu0 %v397_v19  ;;  %v399_v39 = vmax.f32 %v381_v20, 0.0  ;;  %751 = vperm.xlu0 %2249, %v732_v41   ;;  %v1001_v19 = vld [vmem:[%s2893_s10 + $0x30] sm:$0xff]  ;;  %v1002_v20 = vld [vmem:[%s2893_s10 + $0x38] sm:$0xff] }
 0x20e   :  { %v398_v38 = vmax.f32 %v376_v37, 0.0  ;;  %v2173_v21 = vpack.c.bf16 %v1002_v20, %v1001_v19  ;;  %v1006_v41 = vld [vmem:[%s2893_s10 + $0x58] sm:$0xff] }
 0x20f   :  { %793 = vperm.xlu1 %2250, %v746_v56   ;;  %v2179_v45 = vpack.c.bf16 %v1006_v41, %v1005_v44  ;;  %v2748_v56 = vld [vmem:[%s2890_s7] ss:$0 sm:$0xff] }
 0x210   :  { %1762 = vmatprep.mubr.f32.mxu0 %v398_v38  ;;  %v1003_v38 = vld [vmem:[%s2893_s10 + $0x40] sm:$0xff] }
 0x211   :  { %1763 = vmatmul.mubr.f32.gmra.mrb[30].mxu0 %v399_v39  ;;  %760 = vperm.xlu0 %2249, %v735_v40   ;;  %v1004_v39 = vld [vmem:[%s2893_s10 + $0x48] sm:$0xff] }
 0x212   :  { %v2176_v42 = vpack.c.bf16 %v1004_v39, %v1003_v38 }
 0x215   :  { %766 = vperm.xlu0 %2249, %v737_v47   ;;  %v1008_v47 = vld [vmem:[%s2893_s10 + $0x68] sm:$0xff] }
 0x216   :  { %v2182_v48 = vpack.c.bf16 %v1008_v47, %v1007_v46 }
 0x219   :  { %772 = vperm.xlu0 %2249, %v739_v49  }
 0x21d   :  { %778 = vperm.xlu0 %2249, %v741_v51   ;;  %v1010_v51 = vld [vmem:[%s2893_s10 + $0x78] sm:$0xff] }
 0x21e   :  { %v2185_v52 = vpack.c.bf16 %v1010_v51, %v1009_v50 }
 0x221   :  { %784 = vperm.xlu0 %2249, %v743_v53  }
 0x225   :  { %790 = vperm.xlu0 %2249, %v745_v55   ;;  %v2279_v55 = vmov 1.0  }
 0x229   :  { %990 = vperm.xlu0 %2249, %v988_v57  }
 0x272   :  { %v755_v20 = vpop.permute.xlu1 %754 }
 0x276   :  { %v758_v50 = vpop.permute.xlu1 %757 }
 0x2c8   :  { %v1743_v58 = vpop.f32.mrb[16].mxu0 }
 0x2c9   :  { %v482_v59 = vpop.f32.mrb[17].mxu0 }
 0x2ca   :  { %v2099_v60 = vpack.c.bf16 %v1743_v58, %v482_v59 }
 0x2cc   :  { %v1746_v61 = vpop.f32.mrb[18].mxu0  ;;  %2100 = vmatprep.subr.bf16.mxu1 %v2099_v60 }
 0x2cd   :  { %v492_v62 = vpop.f32.mrb[19].mxu0  ;;  %2102 = vmatpush3.bf16.msra.mxu1 %v2099_v60 }
 0x2ce   :  { %v2103_v63 = vpack.c.bf16 %v1746_v61, %v492_v62 }
 0x2d0   :  { %v1749_v0 = vpop.f32.mrb[20].mxu0  ;;  %2104 = vmatprep.subr.bf16.mxu1 %v2103_v63 }
 0x2d1   :  { %v502_v1 = vpop.f32.mrb[21].mxu0  ;;  %2106 = vmatpush3.bf16.msra.mxu1 %v2103_v63 }
 0x2d2   :  { %v2107_v2 = vpack.c.bf16 %v1749_v0, %v502_v1 }
 0x2d4   :  { %v1752_v3 = vpop.f32.mrb[22].mxu0  ;;  %2108 = vmatprep.subr.bf16.mxu1 %v2107_v2 }
 0x2d5   :  { %v512_v4 = vpop.f32.mrb[23].mxu0  ;;  %2110 = vmatpush3.bf16.msra.mxu1 %v2107_v2 }
 0x2d6   :  { %v2111_v5 = vpack.c.bf16 %v1752_v3, %v512_v4 }
 0x2d8   :  { %v1755_v6 = vpop.f32.mrb[24].mxu0  ;;  %2112 = vmatprep.subr.bf16.mxu1 %v2111_v5 }
 0x2d9   :  { %v522_v7 = vpop.f32.mrb[25].mxu0  ;;  %2114 = vmatpush3.bf16.msra.mxu1 %v2111_v5 }
 0x2da   :  { %v2115_v8 = vpack.c.bf16 %v1755_v6, %v522_v7 }
 0x2dc   :  { %v1758_v9 = vpop.f32.mrb[26].mxu0  ;;  %2116 = vmatprep.subr.bf16.mxu1 %v2115_v8 }
 0x2dd   :  { %v532_v10 = vpop.f32.mrb[27].mxu0  ;;  %2118 = vmatpush3.bf16.msra.mxu1 %v2115_v8 }
 0x2de   :  { %v2119_v11 = vpack.c.bf16 %v1758_v9, %v532_v10 }
 0x2e0   :  { %v1761_v12 = vpop.f32.mrb[28].mxu0  ;;  %2120 = vmatprep.subr.bf16.mxu1 %v2119_v11 }
 0x2e1   :  { %v542_v13 = vpop.f32.mrb[29].mxu0  ;;  %2122 = vmatpush3.bf16.msra.mxu1 %v2119_v11 }
 0x2e2   :  { %v2123_v14 = vpack.c.bf16 %v1761_v12, %v542_v13 }
 0x2e4   :  { %v1764_v15 = vpop.f32.mrb[30].mxu0  ;;  %2124 = vmatprep.subr.bf16.mxu1 %v2123_v14 }
 0x2e5   :  { %v552_v16 = vpop.f32.mrb[31].mxu0  ;;  %2126 = vmatpush3.bf16.msra.mxu1 %v2123_v14 }
 0x2e6   :  { %v2127_v17 = vpack.c.bf16 %v1764_v15, %v552_v16 }
 0x2e8   :  { %2128 = vmatprep.subr.bf16.mxu1 %v2127_v17 }
 0x2e9   :  { %2130 = vmatpush3.bf16.msra.mxu1 %v2127_v17 }
 0x2ec   :  { %1798 = vmatmul.mubr.f32.vlgmr.msra.gmra.mrb[16].mxu1 %v2488_v22  ;;  %v2651_v22 = vpop.permute.xlu0 %748 }
 0x2ed   :  { %1800 = vmatprep.mubr.f32.mxu1 %v2493_v23  ;;  %v995_v23 = vld [vmem:[%s2893_s10] sm:$0xff] }
 0x2f0   :  { %1801 = vmatmul.mubr.f32.gmra.mrb[18].mxu1 %v2500_v24  ;;  %v996_v24 = vld [vmem:[%s2893_s10 + $0x8] sm:$0xff] }
 0x2f1   :  { %1803 = vmatprep.mubr.f32.mxu1 %v2505_v25  ;;  %v2164_v25 = vpack.c.bf16 %v996_v24, %v995_v23 }
 0x2f4   :  { %1804 = vmatmul.mubr.f32.gmra.mrb[20].mxu1 %v2512_v26  ;;  %v2276_v26 = vmov 0.0|0.0  }
 0x2f5   :  { %1806 = vmatprep.mubr.f32.mxu1 %v2517_v27  ;;  %2163 = vmatprep.subr.bf16.mxu1 %v2276_v26  ;;  %v2660_v27 = vpop.permute.xlu0 %751 }
 0x2f6   :  { %2165 = vmatpush3.bf16.msra.mxu1 %v2164_v25 }
 0x2f7   :  { %2166 = vmatprep.subr.bf16.mxu1 %v2276_v26 }
 0x2f8   :  { %1807 = vmatmul.mubr.f32.gmra.mrb[22].mxu1 %v2524_v28  ;;  %v997_v28 = vld [vmem:[%s2893_s10 + $0x10] sm:$0xff] }
 0x2f9   :  { %1809 = vmatprep.mubr.f32.mxu1 %v2529_v29  ;;  %v998_v29 = vld [vmem:[%s2893_s10 + $0x18] sm:$0xff] }
 0x2fc   :  { %1810 = vmatmul.mubr.f32.gmra.mrb[24].mxu1 %v2536_v30  ;;  %v729_v30 = vlaneseq }
 0x2fd   :  { %1812 = vmatprep.mubr.f32.mxu1 %v2541_v31  ;;  %v2167_v31 = vpack.c.bf16 %v998_v29, %v997_v28 }
 0x2ff   :  { %2168 = vmatpush3.bf16.msra.mxu1 %v2167_v31 }
 0x300   :  { %1813 = vmatmul.mubr.f32.gmra.mrb[26].mxu1 %v2548_v32  ;;  %v2669_v32 = vand.u32 127, %v729_v30  ;;  %2169 = vmatprep.subr.bf16.mxu1 %v2276_v26 }
 0x301   :  { %1815 = vmatprep.mubr.f32.mxu1 %v2553_v33  ;;  %v2671_v33 = vpop.permute.xlu0 %760 }
 0x302   :  { %vm796_vm0 = vcmp.eq.s32.totalorder %v2669_v32, %v2660_v27  ;;  %vm799_vm1 = vcmp.eq.s32.totalorder %v2669_v32, %v2671_v33  ;;  %vm795_vm6 = vcmp.eq.s32.totalorder %v2669_v32, %v2651_v22  ;;  %vm797_vm10 = vcmp.eq.s32.totalorder %v2669_v32, %v755_v20 }
 0x303   :  { %1853 = vmatprep.mubr.msk.f32.mxu0 %vm795_vm6, %v2279_v55  ;;  %vm798_vm11 = vcmp.eq.s32.totalorder %v2669_v32, %v758_v50 }
 0x304   :  { %1816 = vmatmul.mubr.f32.gmra.mrb[28].mxu1 %v2560_v34  ;;  %v999_v34 = vld [vmem:[%s2893_s10 + $0x20] sm:$0xff] }
 0x305   :  { %1818 = vmatprep.mubr.f32.mxu1 %v2565_v35  ;;  %v1000_v35 = vld [vmem:[%s2893_s10 + $0x28] sm:$0xff]  ;;  %v2682_v18 = vpop.permute.xlu0 %766 }
 0x306   :  { %vm801_vm2 = vcmp.eq.s32.totalorder %v2669_v32, %v2682_v18 }
 0x308   :  { %1819 = vmatmul.mubr.f32.gmra.mrb[30].mxu1 %v2572_v36  ;;  %v2170_v36 = vpack.c.bf16 %v1000_v35, %v999_v34 }
 0x309   :  { %v2693_v37 = vpop.permute.xlu0 %772  ;;  %1909 = vmatprep.mubr.msk.f32.mxu1 %vm2277_vm9, %v2278_v54 }
 0x30a   :  { %2171 = vmatpush3.bf16.msra.mxu1 %v2170_v36  ;;  %vm803_vm3 = vcmp.eq.s32.totalorder %v2669_v32, %v2693_v37 }
 0x30b   :  { %2172 = vmatprep.subr.bf16.mxu1 %v2276_v26 }
 0x30d   :  { %v2704_v43 = vpop.permute.xlu0 %778 }
 0x30e   :  { %2174 = vmatpush3.bf16.msra.mxu1 %v2173_v21  ;;  %vm805_vm4 = vcmp.eq.s32.totalorder %v2669_v32, %v2704_v43 }
 0x30f   :  { %2175 = vmatprep.subr.bf16.mxu1 %v2276_v26 }
 0x311   :  { %v2715_v40 = vpop.permute.xlu0 %784 }
 0x312   :  { %2177 = vmatpush3.bf16.msra.mxu1 %v2176_v42  ;;  %vm807_vm5 = vcmp.eq.s32.totalorder %v2669_v32, %v2715_v40 }
 0x313   :  { %2178 = vmatprep.subr.bf16.mxu1 %v2276_v26 }
 0x315   :  { %v2726_v49 = vpop.permute.xlu0 %790 }
 0x316   :  { %2180 = vmatpush3.bf16.msra.mxu1 %v2179_v45  ;;  %vm809_vm7 = vcmp.eq.s32.totalorder %v2669_v32, %v2726_v49 }
 0x317   :  { %2181 = vmatprep.subr.bf16.mxu1 %v2276_v26 }
 0x319   :  { %v991_v53 = vpop.permute.xlu0 %990 }
 0x31a   :  { %2183 = vmatpush3.bf16.msra.mxu1 %v2182_v48  ;;  %vm992_vm8 = vcmp.eq.s32.totalorder %v2669_v32, %v991_v53 }
 0x31b   :  { %2184 = vmatprep.subr.bf16.mxu1 %v2276_v26 }
 0x31e   :  { %2186 = vmatpush3.bf16.msra.mxu1 %v2185_v52 }
 0x31f   :  { %2219 = vmatprep.subr.bf16.mxu1 %v2276_v26 }
 0x321   :  { %1910 = vmatmul.mubr.msk.f32.vlgmr.msra.gmra.mrb[32].mxu1 %vm992_vm8, %v2279_v55 }
 0x322   :  { %2000 = vmatprep.mubr.msk.f32.mxu1 %vm2277_vm9, %v2278_v54 }
 0x3bf   :  { %v1799_v57 = vpop.f32.mrb[16].mxu1 }
 0x3c0   :  { %v640_v58 = vadd.f32 %v1799_v57, %v2748_v56  ;;  %v634_v59 = vpop.f32.mrb[17].mxu1 }
 0x3c1   :  { %v635_v60 = vadd.f32 %v2748_v56, %v634_v59 }
 0x3c2   :  { %v714_v61 = vmax.f32 %v640_v58, 0.0 }
 0x3c3   :  { %v713_v62 = vmax.f32 %v635_v60, 0.0  ;;  %v1802_v63 = vpop.f32.mrb[18].mxu1  ;;  %v1081_v60 = vld [vmem:[%s2891_s8] sm:$0xff] }
 0x3c4   :  { %v650_v0 = vadd.f32 %v1802_v63, %v2748_v56  ;;  %v644_v1 = vpop.f32.mrb[19].mxu1  ;;  %v764_v63 = vpop.permute.xlu1 %763 }
 0x3c5   :  { %v2131_v2 = vpack.c.bf16 %v714_v61, %v713_v62  ;;  %v645_v3 = vadd.f32 %v2748_v56, %v644_v1  ;;  %v1082_v61 = vld [vmem:[%s2891_s8 + $0x8] sm:$0xff]  ;;  %vm800_vm12 = vcmp.eq.s32.totalorder %v2669_v32, %v764_v63 }
 0x3c6   :  { %v716_v4 = vmax.f32 %v650_v0, 0.0  ;;  %v2187_v1 = vpack.c.bf16 %v1082_v61, %v1081_v60 }
 0x3c7   :  { %v715_v5 = vmax.f32 %v645_v3, 0.0  ;;  %v1805_v6 = vpop.f32.mrb[20].mxu1  ;;  %2132 = vmatprep.subr.bf16.mxu0 %v2131_v2 }
 0x3c8   :  { %v660_v7 = vadd.f32 %v1805_v6, %v2748_v56  ;;  %v654_v8 = vpop.f32.mrb[21].mxu1  ;;  %2134 = vmatpush3.bf16.msra.mxu0 %v2131_v2  ;;  %v1083_v2 = vld [vmem:[%s2891_s8 + $0x10] sm:$0xff]  ;;  %v770_v6 = vpop.permute.xlu1 %769 }
 0x3c9   :  { %v2135_v9 = vpack.c.bf16 %v716_v4, %v715_v5  ;;  %v655_v10 = vadd.f32 %v2748_v56, %v654_v8  ;;  %v1085_v4 = vld [vmem:[%s2891_s8 + $0x20] sm:$0xff]  ;;  %v1086_v5 = vld [vmem:[%s2891_s8 + $0x28] sm:$0xff]  ;;  %v1087_v8 = vld [vmem:[%s2891_s8 + $0x30] sm:$0xff]  ;;  %vm802_vm13 = vcmp.eq.s32.totalorder %v2669_v32, %v770_v6 }
 0x3ca   :  { %v718_v11 = vmax.f32 %v660_v7, 0.0  ;;  %v2195_v7 = vpack.c.bf16 %v1086_v5, %v1085_v4 }
 0x3cb   :  { %v717_v12 = vmax.f32 %v655_v10, 0.0  ;;  %v1808_v13 = vpop.f32.mrb[22].mxu1  ;;  %2136 = vmatprep.subr.bf16.mxu0 %v2135_v9 }
 0x3cc   :  { %v670_v14 = vadd.f32 %v1808_v13, %v2748_v56  ;;  %v664_v15 = vpop.f32.mrb[23].mxu1  ;;  %2138 = vmatpush3.bf16.msra.mxu0 %v2135_v9  ;;  %v1088_v9 = vld [vmem:[%s2891_s8 + $0x38] sm:$0xff]  ;;  %v776_v27 = vpop.permute.xlu1 %775  ;;  %v1091_v13 = vld [vmem:[%s2891_s8 + $0x50] sm:$0xff] }
 0x3cd   :  { %v2139_v16 = vpack.c.bf16 %v718_v11, %v717_v12  ;;  %v665_v17 = vadd.f32 %v2748_v56, %v664_v15  ;;  %v2199_v10 = vpack.c.bf16 %v1088_v9, %v1087_v8  ;;  %v1089_v11 = vld [vmem:[%s2891_s8 + $0x40] sm:$0xff]  ;;  %v1090_v12 = vld [vmem:[%s2891_s8 + $0x48] sm:$0xff]  ;;  %vm804_vm14 = vcmp.eq.s32.totalorder %v2669_v32, %v776_v27 }
 0x3ce   :  { %v720_v22 = vmax.f32 %v670_v14, 0.0  ;;  %v2203_v33 = vpack.c.bf16 %v1090_v12, %v1089_v11  ;;  %v1092_v14 = vld [vmem:[%s2891_s8 + $0x58] sm:$0xff] }
 0x3cf   :  { %v719_v23 = vmax.f32 %v665_v17, 0.0  ;;  %v1811_v24 = vpop.f32.mrb[24].mxu1  ;;  %2140 = vmatprep.subr.bf16.mxu0 %v2139_v16  ;;  %v2207_v18 = vpack.c.bf16 %v1092_v14, %v1091_v13  ;;  %v1094_v17 = vld [vmem:[%s2891_s8 + $0x68] sm:$0xff] }
 0x3d0   :  { %v680_v25 = vadd.f32 %v1811_v24, %v2748_v56  ;;  %v674_v28 = vpop.f32.mrb[25].mxu1  ;;  %2142 = vmatpush3.bf16.msra.mxu0 %v2139_v16  ;;  %v782_v15 = vpop.permute.xlu1 %781  ;;  %v1093_v16 = vld [vmem:[%s2891_s8 + $0x60] sm:$0xff]  ;;  %v1096_v24 = vld [vmem:[%s2891_s8 + $0x78] sm:$0xff] }
 0x3d1   :  { %v2143_v29 = vpack.c.bf16 %v720_v22, %v719_v23  ;;  %v675_v30 = vadd.f32 %v2748_v56, %v674_v28  ;;  %v2211_v22 = vpack.c.bf16 %v1094_v17, %v1093_v16  ;;  %vm806_vm15 = vcmp.eq.s32.totalorder %v2669_v32, %v782_v15  ;;  %v1095_v23 = vld [vmem:[%s2891_s8 + $0x70] sm:$0xff] }
 0x3d2   :  { %v722_v31 = vmax.f32 %v680_v25, 0.0  ;;  %v2215_v43 = vpack.c.bf16 %v1096_v24, %v1095_v23 }
 0x3d3   :  { %v721_v34 = vmax.f32 %v675_v30, 0.0  ;;  %v1814_v35 = vpop.f32.mrb[26].mxu1  ;;  %2144 = vmatprep.subr.bf16.mxu0 %v2143_v29 }
 0x3d4   :  { %v690_v36 = vadd.f32 %v1814_v35, %v2748_v56  ;;  %v684_v19 = vpop.f32.mrb[27].mxu1  ;;  %2146 = vmatpush3.bf16.msra.mxu0 %v2143_v29  ;;  %v788_v37 = vpop.permute.xlu1 %787 }
 0x3d5   :  { %v2147_v21 = vpack.c.bf16 %v722_v31, %v721_v34  ;;  %v685_v38 = vadd.f32 %v2748_v56, %v684_v19 }
 0x3d6   :  { %v724_v39 = vmax.f32 %v690_v36, 0.0 }
 0x3d7   :  { %v723_v42 = vmax.f32 %v685_v38, 0.0  ;;  %v1817_v44 = vpop.f32.mrb[28].mxu1  ;;  %2148 = vmatprep.subr.bf16.mxu0 %v2147_v21 }
 0x3d8   :  { %v700_v41 = vadd.f32 %v1817_v44, %v2748_v56  ;;  %v694_v45 = vpop.f32.mrb[29].mxu1  ;;  %2150 = vmatpush3.bf16.msra.mxu0 %v2147_v21  ;;  %v794_v25 = vpop.permute.xlu1 %793 }
 0x3d9   :  { %v2151_v46 = vpack.c.bf16 %v724_v39, %v723_v42  ;;  %v695_v47 = vadd.f32 %v2748_v56, %v694_v45 }
 0x3da   :  { %v726_v48 = vmax.f32 %v700_v41, 0.0  ;;  %v1370_v41 = vld [vmem:[%s2892_s9] ss:$0 sm:$0xff]  ;;  %s2280_s9 = smov [#allocation2]  }
 0x3db   :  { %v725_v51 = vmax.f32 %v695_v47, 0.0  ;;  %v1820_v52 = vpop.f32.mrb[30].mxu1  ;;  %2152 = vmatprep.subr.bf16.mxu0 %v2151_v46  ;;  %s1326_s20 = sshll.u32 %s2280_s9, 4  ;;  %s1327_s20 = int_to_ptr.vmem [resolvable:$true] %s1326_s20 }
 0x3dc   :  { %v710_v53 = vadd.f32 %v1820_v52, %v2748_v56  ;;  %v704_v54 = vpop.f32.mrb[31].mxu1  ;;  %2154 = vmatpush3.bf16.msra.mxu0 %v2151_v46  ;;  %s2251_s21 = scalar_lea.vmem %s1327_s20, 128  ;;  %p2256_p1 = scmp.lt.s32.totalorder %s1327_s20, %s1327_s20 }
 0x3dd   :  { %v2155_v57 = vpack.c.bf16 %v726_v48, %v725_v51  ;;  %v705_v58 = vadd.f32 %v2748_v56, %v704_v54  ;;  %v1084_v56 = vld [vmem:[%s2891_s8 + $0x18] sm:$0xff]  ;;  %p2252_p0 = scmp.ne.s32.totalorder %s1327_s20, %s2251_s21  ;;  %p2257_p2 = scmp.lt.s32.totalorder %s2251_s21, %s2251_s21 }
 0x3de   :  { %v728_v59 = vmax.f32 %v710_v53, 0.0  ;;  %v2191_v3 = vpack.c.bf16 %v1084_v56, %v1083_v2 }
 0x3df   :  { %v727_v62 = vmax.f32 %v705_v58, 0.0  ;;  %2156 = vmatprep.subr.bf16.mxu0 %v2155_v57  ;;  %p2258_p3 = por %p2257_p2, %p2256_p1 }
 0x3e0   :  { %2158 = vmatpush3.bf16.msra.mxu0 %v2155_v57 }
 0x3e1   :  { %v2159_v0 = vpack.c.bf16 %v728_v59, %v727_v62  ;;  %p2259_p4 = pnand %p2258_p3, %p2252_p0 }
 0x3e3   :  { %2160 = vmatprep.subr.bf16.mxu0 %v2159_v0 }
 0x3e4   :  { %2162 = vmatpush3.bf16.msra.mxu0 %v2159_v0 }
 0x3e5   :  { %2188 = vmatprep.subr.bf16.mxu0 %v2187_v1 }
 0x3e7   :  { %1854 = vmatmul.mubr.msk.f32.vlgmr.msra.gmra.mrb[32].mxu0 %vm796_vm0, %v2279_v55  ;;  %vm808_vm0 = vcmp.eq.s32.totalorder %v2669_v32, %v788_v37 }
 0x3e8   :  { %1856 = vmatprep.mubr.msk.f32.mxu0 %vm797_vm10, %v2279_v55  ;;  %2190 = vmatpush3.bf16.msra.mxu0 %v2187_v1 }
 0x3e9   :  { %2192 = vmatprep.subr.bf16.mxu0 %v2191_v3 }
 0x3eb   :  { %1857 = vmatmul.mubr.msk.f32.gmra.mrb[34].mxu0 %vm798_vm11, %v2279_v55 }
 0x3ec   :  { %1859 = vmatprep.mubr.msk.f32.mxu0 %vm799_vm1, %v2279_v55  ;;  %2194 = vmatpush3.bf16.msra.mxu0 %v2191_v3  ;;  %vm810_vm1 = vcmp.eq.s32.totalorder %v2669_v32, %v794_v25 }
 0x3ed   :  { %2196 = vmatprep.subr.bf16.mxu0 %v2195_v7 }
 0x3ef   :  { %1860 = vmatmul.mubr.msk.f32.gmra.mrb[36].mxu0 %vm800_vm12, %v2279_v55 }
 0x3f0   :  { %1862 = vmatprep.mubr.msk.f32.mxu0 %vm801_vm2, %v2279_v55  ;;  %2198 = vmatpush3.bf16.msra.mxu0 %v2195_v7 }
 0x3f1   :  { %2200 = vmatprep.subr.bf16.mxu0 %v2199_v10 }
 0x3f3   :  { %1863 = vmatmul.mubr.msk.f32.gmra.mrb[38].mxu0 %vm802_vm13, %v2279_v55 }
 0x3f4   :  { %1865 = vmatprep.mubr.msk.f32.mxu0 %vm803_vm3, %v2279_v55  ;;  %2202 = vmatpush3.bf16.msra.mxu0 %v2199_v10  ;;  %v2858_v40 = vpop.f32.mrb[32].mxu1 }
 0x3f5   :  { %2204 = vmatprep.subr.bf16.mxu0 %v2203_v33  ;;  %v1911_v28 = vpop.f32.mrb[33].mxu1 }
 0x3f7   :  { %1866 = vmatmul.mubr.msk.f32.gmra.mrb[40].mxu0 %vm804_vm14, %v2279_v55 }
 0x3f8   :  { %1868 = vmatprep.mubr.msk.f32.mxu0 %vm805_vm4, %v2279_v55  ;;  %2206 = vmatpush3.bf16.msra.mxu0 %v2203_v33 }
 0x3f9   :  { %2208 = vmatprep.subr.bf16.mxu0 %v2207_v18 }
 0x3fb   :  { %1869 = vmatmul.mubr.msk.f32.gmra.mrb[42].mxu0 %vm806_vm15, %v2279_v55 }
 0x3fc   :  { %1871 = vmatprep.mubr.msk.f32.mxu0 %vm807_vm5, %v2279_v55  ;;  %2210 = vmatpush3.bf16.msra.mxu0 %v2207_v18 }
 0x3fd   :  { %2212 = vmatprep.subr.bf16.mxu0 %v2211_v22 }
 0x3ff   :  { %1872 = vmatmul.mubr.msk.f32.gmra.mrb[44].mxu0 %vm808_vm0, %v2279_v55 }
 0x400   :  { %1874 = vmatprep.mubr.msk.f32.mxu0 %vm809_vm7, %v2279_v55  ;;  %2214 = vmatpush3.bf16.msra.mxu0 %v2211_v22 }
 0x401   :  { %2216 = vmatprep.subr.bf16.mxu0 %v2215_v43 }
 0x403   :  { %1875 = vmatmul.mubr.msk.f32.gmra.mrb[46].mxu0 %vm810_vm1, %v2279_v55 }
 0x404   :  { %2218 = vmatpush3.bf16.msra.mxu0 %v2215_v43 }
 0x4ba   :  { %v1855_v29 = vpop.f32.mrb[32].mxu0 }
 0x4bb   :  { %v909_v30 = vpop.f32.mrb[33].mxu0 }
 0x4bc   :  { %1944 = vmatprep.mubr.f32.mxu0 %v909_v30 }
 0x4bd   :  { %1945 = vmatmul.mubr.f32.vlgmr.msra.gmra.mrb[48].mxu0 %v1855_v29 }
 0x4be   :  { %v1858_v31 = vpop.f32.mrb[34].mxu0 }
 0x4bf   :  { %v919_v34 = vpop.f32.mrb[35].mxu0 }
 0x4c0   :  { %1947 = vmatprep.mubr.f32.mxu0 %v919_v34 }
 0x4c1   :  { %1948 = vmatmul.mubr.f32.gmra.mrb[50].mxu0 %v1858_v31 }
 0x4c2   :  { %v1861_v49 = vpop.f32.mrb[36].mxu0 }
 0x4c3   :  { %v929_v35 = vpop.f32.mrb[37].mxu0 }
 0x4c4   :  { %1950 = vmatprep.mubr.f32.mxu0 %v929_v35 }
 0x4c5   :  { %1951 = vmatmul.mubr.f32.gmra.mrb[52].mxu0 %v1861_v49 }
 0x4c6   :  { %v1864_v36 = vpop.f32.mrb[38].mxu0 }
 0x4c7   :  { %v939_v32 = vpop.f32.mrb[39].mxu0 }
 0x4c8   :  { %1953 = vmatprep.mubr.f32.mxu0 %v939_v32 }
 0x4c9   :  { %1954 = vmatmul.mubr.f32.gmra.mrb[54].mxu0 %v1864_v36 }
 0x4ca   :  { %v1867_v55 = vpop.f32.mrb[40].mxu0 }
 0x4cb   :  { %v949_v19 = vpop.f32.mrb[41].mxu0 }
 0x4cc   :  { %1956 = vmatprep.mubr.f32.mxu0 %v949_v19 }
 0x4cd   :  { %1957 = vmatmul.mubr.f32.gmra.mrb[56].mxu0 %v1867_v55 }
 0x4ce   :  { %v1870_v20 = vpop.f32.mrb[42].mxu0 }
 0x4cf   :  { %v959_v21 = vpop.f32.mrb[43].mxu0 }
 0x4d0   :  { %1959 = vmatprep.mubr.f32.mxu0 %v959_v21 }
 0x4d1   :  { %1960 = vmatmul.mubr.f32.gmra.mrb[58].mxu0 %v1870_v20 }
 0x4d2   :  { %v1873_v38 = vpop.f32.mrb[44].mxu0 }
 0x4d3   :  { %v969_v39 = vpop.f32.mrb[45].mxu0 }
 0x4d4   :  { %1962 = vmatprep.mubr.f32.mxu0 %v969_v39 }
 0x4d5   :  { %1963 = vmatmul.mubr.f32.gmra.mrb[60].mxu0 %v1873_v38 }
 0x4d6   :  { %v1876_v42 = vpop.f32.mrb[46].mxu0 }
 0x4d7   :  { %v979_v44 = vpop.f32.mrb[47].mxu0 }
 0x4d8   :  { %1965 = vmatprep.mubr.f32.mxu0 %v979_v44 }
 0x4d9   :  { %1966 = vmatmul.mubr.f32.gmra.mrb[62].mxu0 %v1876_v42 }
 0x590   :  { %v1946_v45 = vpop.f32.mrb[48].mxu0 }
 0x591   :  { %v1176_v46 = vadd.f32 %v1946_v45, %v1370_v41  ;;  %v1170_v47 = vpop.f32.mrb[49].mxu0 }
 0x592   :  { %v1171_v48 = vadd.f32 %v1370_v41, %v1170_v47 }
 0x594   :  { %v2220_v50 = vpack.c.bf16 %v1176_v46, %v1171_v48  ;;  %v1949_v51 = vpop.f32.mrb[50].mxu0 }
 0x595   :  { %v1186_v52 = vadd.f32 %v1949_v51, %v1370_v41  ;;  %v1180_v53 = vpop.f32.mrb[51].mxu0 }
 0x596   :  { %v1181_v54 = vadd.f32 %v1370_v41, %v1180_v53  ;;  %2221 = vmatpush3.bf16.xpose.msra.mxu1 %v2220_v50 }
 0x597   :  { %2222 = vmatprep.subr.bf16.mxu1 %v2276_v26 }
 0x598   :  { %v2223_v57 = vpack.c.bf16 %v1186_v52, %v1181_v54  ;;  %v1952_v58 = vpop.f32.mrb[52].mxu0 }
 0x599   :  { %v1196_v59 = vadd.f32 %v1952_v58, %v1370_v41  ;;  %v1190_v60 = vpop.f32.mrb[53].mxu0 }
 0x59a   :  { %v1191_v61 = vadd.f32 %v1370_v41, %v1190_v60 }
 0x59c   :  { %v2226_v62 = vpack.c.bf16 %v1196_v59, %v1191_v61  ;;  %v1955_v63 = vpop.f32.mrb[54].mxu0 }
 0x59d   :  { %v1206_v0 = vadd.f32 %v1955_v63, %v1370_v41  ;;  %v1200_v1 = vpop.f32.mrb[55].mxu0 }
 0x59e   :  { %v1201_v2 = vadd.f32 %v1370_v41, %v1200_v1  ;;  %2224 = vmatpush3.bf16.xpose.msra.mxu1 %v2223_v57 }
 0x59f   :  { %2225 = vmatprep.subr.bf16.mxu1 %v2276_v26 }
 0x5a0   :  { %v2229_v56 = vpack.c.bf16 %v1206_v0, %v1201_v2  ;;  %v1958_v3 = vpop.f32.mrb[56].mxu0 }
 0x5a1   :  { %v1216_v4 = vadd.f32 %v1958_v3, %v1370_v41  ;;  %v1210_v5 = vpop.f32.mrb[57].mxu0 }
 0x5a2   :  { %v1211_v6 = vadd.f32 %v1370_v41, %v1210_v5 }
 0x5a4   :  { %v2232_v7 = vpack.c.bf16 %v1216_v4, %v1211_v6  ;;  %v1961_v8 = vpop.f32.mrb[58].mxu0 }
 0x5a5   :  { %v1226_v9 = vadd.f32 %v1961_v8, %v1370_v41  ;;  %v1220_v27 = vpop.f32.mrb[59].mxu0 }
 0x5a6   :  { %v1221_v10 = vadd.f32 %v1370_v41, %v1220_v27  ;;  %2227 = vmatpush3.bf16.xpose.msra.mxu1 %v2226_v62 }
 0x5a7   :  { %2228 = vmatprep.subr.bf16.mxu1 %v2276_v26 }
 0x5a8   :  { %v2235_v11 = vpack.c.bf16 %v1226_v9, %v1221_v10  ;;  %v1964_v12 = vpop.f32.mrb[60].mxu0 }
 0x5a9   :  { %v1236_v33 = vadd.f32 %v1964_v12, %v1370_v41  ;;  %v1230_v13 = vpop.f32.mrb[61].mxu0 }
 0x5aa   :  { %v1231_v14 = vadd.f32 %v1370_v41, %v1230_v13 }
 0x5ac   :  { %v2238_v15 = vpack.c.bf16 %v1236_v33, %v1231_v14  ;;  %v1967_v18 = vpop.f32.mrb[62].mxu0 }
 0x5ad   :  { %v1246_v16 = vadd.f32 %v1967_v18, %v1370_v41  ;;  %v1240_v17 = vpop.f32.mrb[63].mxu0 }
 0x5ae   :  { %v1241_v37 = vadd.f32 %v1370_v41, %v1240_v17  ;;  %2230 = vmatpush3.bf16.xpose.msra.mxu1 %v2229_v56 }
 0x5af   :  { %2231 = vmatprep.subr.bf16.mxu1 %v2276_v26 }
 0x5b0   :  { %v2241_v22 = vpack.c.bf16 %v1246_v16, %v1241_v37 }
 0x5b6   :  { %2233 = vmatpush3.bf16.xpose.msra.mxu1 %v2232_v7 }
 0x5b7   :  { %2234 = vmatprep.subr.bf16.mxu1 %v2276_v26 }
 0x5be   :  { %2236 = vmatpush3.bf16.xpose.msra.mxu1 %v2235_v11 }
 0x5bf   :  { %2237 = vmatprep.subr.bf16.mxu1 %v2276_v26 }
 0x5c6   :  { %2239 = vmatpush3.bf16.xpose.msra.mxu1 %v2238_v15 }
 0x5c7   :  { %2240 = vmatprep.subr.bf16.mxu1 %v2276_v26 }
 0x5ce   :  { %2242 = vmatpush3.bf16.xpose.msra.mxu1 %v2241_v22 }
 0x5d5   :  { %2001 = vmatmul.mubr.f32.vlgmr.msra.gmra.mrb[34].mxu1 %v2858_v40 }
 0x6a8   :  { %v1315_v23 = vpop.f32.mrb[34].mxu1 }
 0x6a9   :  { %1319 = vst [vmem:[#allocation2] sm:$0xff] %v1315_v23  ;;  %v2002_v24 = vpop.f32.mrb[35].mxu1 }
 0x6aa   :  { %2262 = shalt.err (!%p2259_p4)
}
 0x6ab   :  { %s2263_s24 = scalar_lea.hbm %s2894_s11, 128 }
 0x6ac   :  { %p2264_p5 = scmp.ne.s32.totalorder %s2894_s11, %s2263_s24  ;;  %p2267_p6 = scmp.lt.u32.totalorder %s2263_s24, %s2894_s11 }
 0x6ae   :  { %p2269_p7 = pnand %p2267_p6, %p2264_p5 }
 0x6b0   :  { %2272 = shalt.err (!%p2269_p7)
}
 0x6b1   :  { %1329 = dma.vmem_to_hbm [thread:$0]  %s1327_s20, 128, %s2894_s11, [#allocation3]  }
 0x6b2   :  { %2273 = dma.done.wait [#allocation3], 128  }
 0x6b3   :  { %2274 = vsyncadd [#allocation3], 4294967168 }
 0x6b4   :  { %1333 = vsyncpa [#allocation3], 1 }

</bundles_post_ra>
